<compile_context>
chip_gen: v5e
topology: v5e:2x2
jax: 0.10.0
libtpu: 0.0.40
codegen_flags: <defaults>
</compile_context>

<pallas_src>
import math
import functools

import jax
import jax.numpy as jnp
from jax import lax
from jax.experimental import pallas as pl
from jax.experimental.pallas import tpu as pltpu


def _build_pe(max_len: int, d_model: int, dtype=jnp.float32) -> jnp.ndarray:
    """Sinusoidal positional encoding table, shape [max_len, d_model]."""
    position = jnp.arange(0, max_len, dtype=jnp.float32)[:, None]          # [T, 1]
    div_term = jnp.exp(
        jnp.arange(0, d_model, 2, dtype=jnp.float32)
        * -(math.log(10000.0) / d_model)
    )                                                                       # [D/2]
    args = position * div_term                                              # [T, D/2]
    # pe[:, 0::2] = sin, pe[:, 1::2] = cos  -> interleave along last dim.
    pe = jnp.stack([jnp.sin(args), jnp.cos(args)], axis=-1).reshape(max_len, d_model)
    return pe.astype(dtype)


def _i32(v: int) -> int:
    """Python int -> int32 two's-complement value (for wrapping hash constants)."""
    v &= 0xFFFFFFFF
    return v - (1 << 32) if v >= (1 << 31) else v


def _choose_tile_rows(rows: int, lane: int, itemsize: int, target_bytes: int) -> int:
    """Sublane-aligned row-tile sized to ~target_bytes per (tile_rows, lane) tile."""
    r = target_bytes // max(1, lane * itemsize)
    r = max(8, (r // 8) * 8)
    return rows if r >= rows else r


def _posenc_kernel(x_ref, pe_ref, o_ref, *, xscale):
    # x_ref: [tile_b, tile_r, lane]   pe_ref: [tile_r, lane]
    x = x_ref[...]
    val = x * jnp.asarray(xscale, dtype=x.dtype) + pe_ref[...]
    o_ref[...] = val.astype(o_ref.dtype)


def _posenc_dropout_kernel(seed_ref, x_ref, pe_ref, o_ref, *,
                           xscale, rows_total, tile_rows, lane,
                           keep_threshold, inv_keep):
    # x_ref: [1, tile_r, lane]   pe_ref: [tile_r, lane]   seed_ref: SMEM [1]
    x = x_ref[...]
    val = x * jnp.asarray(xscale, dtype=x.dtype) + pe_ref[...]

    # Counter-based Bernoulli(keep_prob) mask: hash the element's global
    # (batch, row, col) index mixed with the user seed (lowbias32 finisher).
    # Portable (no pltpu.prng_*), unique per element across all tiles/batches.
    t = pl.program_id(0)           # row-tile (outer grid axis)
    b = pl.program_id(1)           # batch    (inner grid axis)
    shape = val.shape
    local_row = lax.broadcasted_iota(jnp.int32, shape, 1)
    col = lax.broadcasted_iota(jnp.int32, shape, 2)
    grow = t * tile_rows + local_row
    elem = (b * rows_total + grow) * lane + col

    key = seed_ref[0] * jnp.int32(_i32(0x9E3779B1)) + jnp.int32(_i32(0x85EBCA6B))
    h = elem ^ key
    h = h ^ lax.shift_right_logical(h, jnp.int32(16))
    h = h * jnp.int32(_i32(0x7FEB352D))
    h = h ^ lax.shift_right_logical(h, jnp.int32(15))
    h = h * jnp.int32(_i32(0x846CA68B))
    h = h ^ lax.shift_right_logical(h, jnp.int32(16))
    r23 = lax.shift_right_logical(h, jnp.int32(9))      # 23 uniform bits, >= 0

    keep = r23 < jnp.int32(keep_threshold)               # integer-domain Bernoulli
    val = jnp.where(keep, val * jnp.asarray(inv_keep, dtype=val.dtype),
                    jnp.zeros_like(val))
    o_ref[...] = val.astype(o_ref.dtype)


def espnet_positional_encoding(
    x: jnp.ndarray,
    pe_table: jnp.ndarray,
    *,
    dropout_rate: float = 0.0,
    seed: int = 0,
) -> jnp.ndarray:
    """Apply ESPNet absolute positional encoding: x*sqrt(D) + pe[:T], then dropout."""
    B, T, D = x.shape
    if T > pe_table.shape[0]:
        raise ValueError("sequence length exceeds positional-encoding table")
    xscale = math.sqrt(D)

    pe = pe_table[:T, :]
    if pe.dtype != x.dtype:                      # matches extend_pe's dtype behavior
        pe = pe.astype(x.dtype)

    # ---- lane-dense view: last dim always a multiple of 128 --------------------
    if D % 128 == 0:
        rows, lane = T, D
        flat, pad = T * D, 0
        x_view, pe_view = x, pe
    else:
        flat = T * D
        lane = 128
        padded = ((flat + 127) // 128) * 128
        pad = padded - flat
        rows = padded // lane
        x_flat = x.reshape(B, flat)
        pe_flat = pe.reshape(flat)
        if pad:
            x_flat = jnp.pad(x_flat, ((0, 0), (0, pad)))
            pe_flat = jnp.pad(pe_flat, ((0, pad),))
        x_view = x_flat.reshape(B, rows, lane)
        pe_view = pe_flat.reshape(rows, lane)

    itemsize = jnp.dtype(x.dtype).itemsize
    compiler_params = pltpu.CompilerParams(
        dimension_semantics=("parallel", "parallel"),
        vmem_limit_bytes=32 * 1024 * 1024,        # v5e scoped default is only 16 MiB
    )
    cost = pl.CostEstimate(
        flops=2 * B * rows * lane,                # mul + add (dropout extras advisory)
        transcendentals=0,
        bytes_accessed=(2 * B * rows * lane + rows * lane) * itemsize,
    )
    out_shape = jax.ShapeDtypeStruct((B, rows, lane), x.dtype)

    if dropout_rate <= 0.0:
        # Inference path: no seed, no scalar prefetch.
        target = 4 * 1024 * 1024
        if B * rows * lane * itemsize <= target:
            tile_b, tile_r = B, rows              # tiny input -> single grid step
        else:
            tile_b = 1
            tile_r = _choose_tile_rows(rows, lane, itemsize, target)
        grid = (pl.cdiv(rows, tile_r), pl.cdiv(B, tile_b))   # row-tiles outer, batch inner
        x_block = (tile_b, tile_r, lane)
        pe_block = (tile_r, lane)
        out = pl.pallas_call(
            functools.partial(_posenc_kernel, xscale=xscale),
            out_shape=out_shape,
            grid=grid,
            in_specs=[
                pl.BlockSpec(x_block, lambda t, b: (b, t, 0)),
                pl.BlockSpec(pe_block, lambda t, b: (t, 0)),   # invariant in inner axis
            ],
            out_specs=pl.BlockSpec(x_block, lambda t, b: (b, t, 0)),
            compiler_params=compiler_params,
            cost_estimate=cost,
        )(x_view, pe_view)
    else:
        keep_prob = 1.0 - float(dropout_rate)
        if keep_prob <= 0.0:
            keep_threshold = 0                     # drop everything
            inv_keep = 0.0
        else:
            keep_threshold = min(int(round(keep_prob * float(1 << 23))), 1 << 23)
            inv_keep = 1.0 / keep_prob
        # Smaller tiles: leave VMEM headroom for the mask/temporaries (v7x: 64 MiB).
        target = 2 * 1024 * 1024
        tile_r = _choose_tile_rows(rows, lane, itemsize, target)
        grid = (pl.cdiv(rows, tile_r), B)
        x_block = (1, tile_r, lane)
        pe_block = (tile_r, lane)
        seed_arr = jnp.asarray([seed], dtype=jnp.int32)

        out = pl.pallas_call(
            functools.partial(_posenc_dropout_kernel, xscale=xscale,
                              rows_total=rows, tile_rows=tile_r, lane=lane,
                              keep_threshold=keep_threshold, inv_keep=inv_keep),
            out_shape=out_shape,
            grid_spec=pltpu.PrefetchScalarGridSpec(
                num_scalar_prefetch=1,             # seed lands in SMEM
                grid=grid,
                in_specs=[
                    pl.BlockSpec(x_block, lambda t, b, seed: (b, t, 0)),
                    pl.BlockSpec(pe_block, lambda t, b, seed: (t, 0)),
                ],
                out_specs=pl.BlockSpec(x_block, lambda t, b, seed: (b, t, 0)),
            ),
            compiler_params=compiler_params,
            cost_estimate=cost,
        )(seed_arr, x_view, pe_view)

    if D % 128 == 0:
        return out
    out_flat = out.reshape(B, rows * lane)
    if pad:
        out_flat = out_flat[:, :flat]
    return out_flat.reshape(B, T, D)


if __name__ == "__main__":
    # Module config (small, consistent with the forward's [B, T, D] contract).
    d_model = 32
    max_len = 64
    B, T = 2, 8

    key = jax.random.PRNGKey(0)
    x = jax.random.normal(key, (B, T, d_model), dtype=jnp.float32)

    # "Parameter" / buffer setup (extend_pe equivalent), deterministic.
    pe_table = _build_pe(max_len, d_model, dtype=jnp.float32)

    # --- inference path (dropout identity), T*D divisible by 128 ---
    out = jax.block_until_ready(
        espnet_positional_encoding(x, pe_table, dropout_rate=0.0))
    ref = x * math.sqrt(d_model) + pe_table[None, :T, :]
    assert out.shape == (B, T, d_model)
    assert jnp.allclose(out, ref, atol=1e-5, rtol=1e-5)

    # --- inference path exercising the lane-padding fallback (T*D % 128 != 0) ---
    T2 = 7
    x2 = x[:, :T2, :]
    out2 = jax.block_until_ready(
        espnet_positional_encoding(x2, pe_table, dropout_rate=0.0))
    ref2 = x2 * math.sqrt(d_model) + pe_table[None, :T2, :]
    assert out2.shape == (B, T2, d_model)
    assert jnp.allclose(out2, ref2, atol=1e-5, rtol=1e-5)

    # --- training path (dropout active) ---
    # Every output element must be either exactly dropped (0) or the kept
    # value ref / keep_prob (inverted dropout scaling).
    drop = 0.25
    out_d = jax.block_until_ready(
        espnet_positional_encoding(x, pe_table, dropout_rate=drop, seed=123))
    ref_kept = ref / (1.0 - drop)
    is_zero = jnp.abs(out_d) <= 1e-6
    is_kept = jnp.isclose(out_d, ref_kept, atol=1e-3, rtol=1e-3)
    assert out_d.shape == (B, T, d_model)
    assert bool(jnp.all(jnp.logical_or(is_zero, is_kept)))

    print("KERNEL_OK")
</pallas_src>

<mosaic_0001>
module attributes {stable_mosaic.version = 11 : i64} {
  func.func @_posenc_kernel(%arg0: i32, %arg1: i32, %arg2: memref<2x2x128xf32, #tpu.memory_space<vmem>>, %arg3: memref<2x128xf32, #tpu.memory_space<vmem>>, %arg4: memref<2x2x128xf32, #tpu.memory_space<vmem>>) attributes {dimension_semantics = [#tpu.dimension_semantics<parallel>, #tpu.dimension_semantics<parallel>], iteration_bounds = array<i64: 1, 1>, scalar_prefetch = 0 : i64, scratch_operands = 0 : i64, tpu.core_type = #tpu.core_type<tc>, window_params = [{transform_indices = @transform_0, window_bounds = array<i64: 2, 2, 128>}, {transform_indices = @transform_1, window_bounds = array<i64: 2, 128>}, {transform_indices = @transform_2, window_bounds = array<i64: 2, 2, 128>}]} {
    %c0 = arith.constant 0 : index
    %c0_0 = arith.constant 0 : index
    %c0_1 = arith.constant 0 : index
    %0 = vector.load %arg2[%c0, %c0_0, %c0_1] : memref<2x2x128xf32, #tpu.memory_space<vmem>>, vector<2x2x128xf32>
    %cst = arith.constant 5.65685415 : f32
    %1 = vector.broadcast %cst : f32 to vector<2x2x128xf32>
    %2 = arith.mulf %0, %1 : vector<2x2x128xf32>
    %c0_2 = arith.constant 0 : index
    %c0_3 = arith.constant 0 : index
    %3 = vector.load %arg3[%c0_2, %c0_3] : memref<2x128xf32, #tpu.memory_space<vmem>>, vector<2x128xf32>
    %4 = vector.shape_cast %3 : vector<2x128xf32> to vector<1x2x128xf32>
    %5 = vector.broadcast %4 : vector<1x2x128xf32> to vector<2x2x128xf32>
    %6 = arith.addf %2, %5 : vector<2x2x128xf32>
    %c0_4 = arith.constant 0 : index
    %c0_5 = arith.constant 0 : index
    %c0_6 = arith.constant 0 : index
    %7 = vector.load %arg4[%c0_4, %c0_5, %c0_6] : memref<2x2x128xf32, #tpu.memory_space<vmem>>, vector<2x2x128xf32>
    tpu.vector_store %arg4[%c0_4, %c0_5, %c0_6], %6 {strides = array<i32>} : memref<2x2x128xf32, #tpu.memory_space<vmem>>, vector<2x2x128xf32>,
    return
  }
  func.func @transform_0(%arg0: i32, %arg1: i32) -> (i32, i32, i32) {
    %c0_i32 = arith.constant 0 : i32
    %c0_i32_0 = arith.constant 0 : i32
    return %arg1, %arg0, %c0_i32 : i32, i32, i32
  }
  func.func @transform_1(%arg0: i32, %arg1: i32) -> (i32, i32) {
    %c0_i32 = arith.constant 0 : i32
    %c0_i32_0 = arith.constant 0 : i32
    return %arg0, %c0_i32 : i32, i32
  }
  func.func @transform_2(%arg0: i32, %arg1: i32) -> (i32, i32, i32) {
    %c0_i32 = arith.constant 0 : i32
    %c0_i32_0 = arith.constant 0 : i32
    return %arg1, %arg0, %c0_i32 : i32, i32, i32
  }
}

</mosaic_0001>

<bundles_post_ra>
// kernel: tpu_custom_call.1
= control target key start
LH: loop header
LB: loop body
LE: loop exit
PB: predicated region body
PF: predicated region fallthrough
CT: control target
= control target key end

     0   :  { %7 = vsyncpa [#allocation3], 0  ;;  %s183_s0 = inlined_call_operand.hbm [shape: f32[2,2,128], index: 0, kind: input, shape index: {}]   ;;  %s184_s1 = inlined_call_operand.hbm [shape: f32[2,128], index: 1, kind: input, shape index: {}]   ;;  %s185_s2 = inlined_call_operand.hbm [shape: f32[2,2,128], index: 2, kind: output, shape index: {}]  }
   0x1   :  { %8 = vsyncpa [#allocation6], 0 }
   0x2   :  { %9 = vsyncpa [#allocation4], 0  ;;  %s14_s11 = sshll.u32 %s183_s0, 4  ;;  %s154_s12 = smov [#allocation2]   ;;  %s15_s11 = int_to_ptr.hbm [resolvable:$true] %s14_s11 }
   0x3   :  { %s16_s13 = sshll.u32 %s154_s12, 4  ;;  %s28_s16 = sshll.u32 %s184_s1, 4  ;;  %s17_s13 = int_to_ptr.vmem [resolvable:$true] %s16_s13  ;;  %s29_s16 = int_to_ptr.hbm [resolvable:$true] %s28_s16 }
   0x4   :  { %s155_s17 = smov 32   ;;  %s156_s18 = smov 2  }
   0x5   :  { %22 = dma.hbm_to_vmem [thread:$0]  %s15_s11, 64, %s17_s13, [#allocation3], %s155_s17, %s155_s17, %s156_s18  }
   0x6   :  { %s157_s19 = smov [#allocation5]  }
   0x7   :  { %s30_s20 = sshll.u32 %s157_s19, 4  ;;  %s31_s20 = int_to_ptr.vmem [resolvable:$true] %s30_s20 }
   0x8   :  { %33 = dma.hbm_to_vmem [thread:$0]  %s29_s16, 32, %s31_s20, [#allocation6]  }
   0x9   :  { %148 = dma.done.wait [#allocation3], 64  }
   0xa   :  { %149 = vsyncadd [#allocation3], 4294967232 }
   0xb   :  { %150 = dma.done.wait [#allocation6], 32  }
   0xc   :  { %151 = vsyncadd [#allocation6], 4294967264  ;;  %v42_v0 = vld [vmem:[#allocation2] sm:$0x3]  ;;  %v46_v1 = vld [vmem:[#allocation5] sm:$0x3] }
   0xd   :  { %v43_v2 = vld [vmem:[#allocation2 + $0x2] sm:$0x3]  ;;  %v44_v3 = vmul.f32 5.656854, %v42_v0  ;;  %s158_s0 = smov [#allocation7]   ;;  %s57_s23 = sshll.u32 %s185_s2, 4  ;;  %s58_s23 = int_to_ptr.hbm [resolvable:$true] %s57_s23 }
   0xe   :  { %v45_v4 = vmul.f32 5.656854, %v43_v2  ;;  %s55_s21 = sshll.u32 %s158_s0, 4  ;;  %s56_s21 = int_to_ptr.vmem [resolvable:$true] %s55_s21 }
   0xf   :  { %v47_v5 = vadd.f32 %v46_v1, %v44_v3 }
  0x10   :  { %v48_v6 = vadd.f32 %v46_v1, %v45_v4 }
  0x11   :  { %49 = vst [vmem:[#allocation7] sm:$0x3] %v47_v5 }
  0x12   :  { %50 = vst [vmem:[#allocation7 + $0x2] sm:$0x3] %v48_v6 }
  0x13   :  { %63 = dma.vmem_to_hbm [thread:$0]  %s56_s21, 64, %s58_s23, [#allocation4], %s155_s17, %s155_s17, %s156_s18  }
  0x14   :  { %152 = dma.done.wait [#allocation4], 64  }
  0x15   :  { %153 = vsyncadd [#allocation4], 4294967232 }
  0x16   :  { %68 = vsyncpa [#allocation3], 1 }
  0x17   :  { %69 = vsyncpa [#allocation6], 1 }
  0x18   :  { %70 = vsyncpa [#allocation4], 1 }

</bundles_post_ra>
